<compile_context>
chip_gen: v6e
topology: v6e:2x2x1
jax: 0.10.0
libtpu: 0.0.40
codegen_flags: <defaults>
</compile_context>

<pallas_src>
import functools

import jax
import jax.numpy as jnp
from jax.experimental import pallas as pl
from jax.experimental.pallas import tpu as pltpu


def _demand_lstm_kernel(x_ref, wpack_ref, vpack_ref, out_ref, h_scratch,
                        *, T, Bp, Dp, H, Op):
    # x_ref:     (T*Bp, Dp)    time-major, batch padded to Bp, features zero-padded to Dp
    # wpack_ref: (Dp+H+1, 4H)  rows [0:Dp]=W_ih^T (zero-padded), [Dp:Dp+H]=W_hh^T,
    #                          row [Dp+H]=b_ih+b_hh
    # vpack_ref: (H+1, Op)     rows [0:H]=W_lin^T (lane-padded), row [H]=b_lin (lane-padded)
    # out_ref:   (Bp, T*Op)
    # h_scratch: (T*Bp, H)     VMEM scratch for per-timestep hidden states

    wih = wpack_ref[0:Dp, :]                        # (Dp, 4H)  sublane-aligned static slice
    whh = wpack_ref[Dp:Dp + H, :]                   # (H, 4H)   sublane-aligned static slice
    b_lstm = wpack_ref[Dp + H:Dp + H + 1, :]        # (1, 4H)

    # ---- Prologue: input projection + bias for ALL timesteps, one MXU matmul. ----
    xw = (jnp.dot(x_ref[...], wih, preferred_element_type=jnp.float32)
          + b_lstm)                                 # (T*Bp, 4H)

    h = jnp.zeros((Bp, H), jnp.float32)
    c = jnp.zeros((Bp, H), jnp.float32)

    # ---- Serial recurrence: fully unrolled (T is small and static). ----
    for t in range(T):
        gates = xw[t * Bp:(t + 1) * Bp, :] + jnp.dot(
            h, whh, preferred_element_type=jnp.float32)          # (Bp, 4H)

        sg = jax.nn.sigmoid(gates)      # one full-128-lane sigmoid chain
        th = jnp.tanh(gates)            # one full-128-lane tanh chain
        i_g = sg[:, 0 * H:1 * H]
        f_g = sg[:, 1 * H:2 * H]
        g_g = th[:, 2 * H:3 * H]
        o_g = sg[:, 3 * H:4 * H]

        c = f_g * c + i_g * g_g
        h = o_g * jnp.tanh(c)
        h_scratch[t * Bp:(t + 1) * Bp, :] = h

    # ---- Epilogue: batched Linear + ReLU, then T lane-aligned full-tile stores. ----
    wlin = vpack_ref[0:H, :]                        # (H, Op)
    blin = vpack_ref[H:H + 1, :]                    # (1, Op)
    y = (jnp.dot(h_scratch[...], wlin, preferred_element_type=jnp.float32)
         + blin)                                    # (T*Bp, Op)
    y = jnp.maximum(y, 0.0)
    for t in range(T):
        out_ref[:, t * Op:(t + 1) * Op] = y[t * Bp:(t + 1) * Bp, :]


def prepare_demand_lstm_params(w_ih, w_hh, b_ih, b_hh, w_lin, b_lin):
    """One-time packing of the LSTM + Linear weights for the Pallas kernel.

    Returns (wpack, vpack):
      wpack: (Dp+H+1, 4H) = [W_ih^T zero-padded to Dp rows; W_hh^T; b_ih+b_hh]
      vpack: (H+1, Op)    = [W_lin^T zero-padded to Op lanes; b_lin zero-padded]
    """
    H = w_hh.shape[1]
    D = w_ih.shape[1]
    O = w_lin.shape[0]
    Dp = max(8, ((D + 7) // 8) * 8)
    Op = max(128, ((O + 127) // 128) * 128)

    wih_t = jnp.pad(w_ih.T.astype(jnp.float32), ((0, Dp - D), (0, 0)))    # (Dp, 4H)
    whh_t = w_hh.T.astype(jnp.float32)                                    # (H, 4H)
    b_lstm = (b_ih + b_hh).astype(jnp.float32).reshape(1, 4 * H)          # (1, 4H)
    wpack = jnp.concatenate([wih_t, whh_t, b_lstm], axis=0)               # (Dp+H+1, 4H)

    wlin_t = jnp.pad(w_lin.T.astype(jnp.float32), ((0, 0), (0, Op - O)))  # (H, Op)
    blin = jnp.pad(b_lin.astype(jnp.float32).reshape(1, O),
                   ((0, 0), (0, Op - O)))                                 # (1, Op)
    vpack = jnp.concatenate([wlin_t, blin], axis=0)                       # (H+1, Op)
    return wpack, vpack


@functools.partial(jax.jit, static_argnames=("out_dim",))
def demand_lstm_forward(x, wpack, vpack, *, out_dim):
    """x: (B, T, D) float32; wpack/vpack from prepare_demand_lstm_params.

    Returns (B, T, out_dim) float32 = ReLU(Linear(LSTM(x))).
    """
    B, T, D = x.shape
    H = vpack.shape[0] - 1
    Op = vpack.shape[1]
    Dp = wpack.shape[0] - H - 1
    assert wpack.shape[1] == 4 * H, "packed weight width must be 4*H"

    Bp = max(8, ((B + 7) // 8) * 8)

    # Batch-pad, feature-pad, time-major flatten (all fused under jit).
    x_p = jnp.pad(x.astype(jnp.float32),
                  ((0, Bp - B), (0, 0), (0, Dp - D)))        # (Bp, T, Dp)
    x_tm = jnp.transpose(x_p, (1, 0, 2)).reshape(T * Bp, Dp)

    kernel = functools.partial(_demand_lstm_kernel, T=T, Bp=Bp, Dp=Dp, H=H, Op=Op)
    vmem_spec = pl.BlockSpec(memory_space=pltpu.MemorySpace.VMEM)

    out_flat = pl.pallas_call(
        kernel,
        out_shape=jax.ShapeDtypeStruct((Bp, T * Op), jnp.float32),
        in_specs=[vmem_spec, vmem_spec, vmem_spec],
        out_specs=vmem_spec,
        scratch_shapes=[pltpu.VMEM((T * Bp, H), jnp.float32)],
    )(x_tm, wpack, vpack)

    # (Bp, T*Op) -> (Bp, T, Op) is a contiguous (free) reshape; slice away padding.
    return out_flat.reshape(Bp, T, Op)[:B, :, :out_dim]


def demand_lstm_reference(x, w_ih, w_hh, b_ih, b_hh, w_lin, b_lin):
    """Pure-JAX reference matching torch.nn.LSTM(batch_first=True) + Linear + ReLU."""
    B, T, D = x.shape
    H = w_hh.shape[1]

    def step(carry, x_t):
        h, c = carry
        gates = x_t @ w_ih.T + h @ w_hh.T + b_ih + b_hh
        i = jax.nn.sigmoid(gates[:, 0 * H:1 * H])
        f = jax.nn.sigmoid(gates[:, 1 * H:2 * H])
        g = jnp.tanh(gates[:, 2 * H:3 * H])
        o = jax.nn.sigmoid(gates[:, 3 * H:4 * H])
        c = f * c + i * g
        h = o * jnp.tanh(c)
        return (h, c), h

    h0 = jnp.zeros((B, H), jnp.float32)
    c0 = jnp.zeros((B, H), jnp.float32)
    _, hs = jax.lax.scan(step, (h0, c0), jnp.transpose(x, (1, 0, 2)))
    hs = jnp.transpose(hs, (1, 0, 2))                        # (B, T, H)
    return jnp.maximum(hs @ w_lin.T + b_lin, 0.0)


if __name__ == "__main__":
    # Small shapes consistent with the module: args.input_D_size=4,
    # args.hidden_D_size=32, args.out_D_size=4; batch=2, seq=8.
    B, T, D_in, H, O = 2, 8, 4, 32, 4

    key = jax.random.PRNGKey(0)
    ks = jax.random.split(key, 7)
    scale = 0.1
    x = jax.random.normal(ks[0], (B, T, D_in), jnp.float32)
    w_ih = scale * jax.random.normal(ks[1], (4 * H, D_in), jnp.float32)
    w_hh = scale * jax.random.normal(ks[2], (4 * H, H), jnp.float32)
    b_ih = scale * jax.random.normal(ks[3], (4 * H,), jnp.float32)
    b_hh = scale * jax.random.normal(ks[4], (4 * H,), jnp.float32)
    w_lin = scale * jax.random.normal(ks[5], (O, H), jnp.float32)
    b_lin = scale * jax.random.normal(ks[6], (O,), jnp.float32)

    # One-time weight packing (hoisted out of the per-call path).
    wpack, vpack = prepare_demand_lstm_params(w_ih, w_hh, b_ih, b_hh, w_lin, b_lin)

    out = demand_lstm_forward(x, wpack, vpack, out_dim=O)
    out = jax.block_until_ready(out)

    ref = demand_lstm_reference(x, w_ih, w_hh, b_ih, b_hh, w_lin, b_lin)
    assert out.shape == (B, T, O), f"bad shape {out.shape}"
    assert jnp.allclose(out, ref, atol=1e-4, rtol=1e-4), "mismatch vs reference"

    print("KERNEL_OK")
</pallas_src>

<mosaic_0001>
module attributes {stable_mosaic.version = 11 : i64} {
  func.func @_demand_lstm_kernel(%arg0: memref<64x8xf32, #tpu.memory_space<vmem>>, %arg1: memref<41x128xf32, #tpu.memory_space<vmem>>, %arg2: memref<33x128xf32, #tpu.memory_space<vmem>>, %arg3: memref<8x1024xf32, #tpu.memory_space<vmem>>, %arg4: memref<64x32xf32, #tpu.memory_space<vmem>>) attributes {dimension_semantics = [], scalar_prefetch = 0 : i64, scratch_operands = 1 : i64, tpu.core_type = #tpu.core_type<tc>} {
    %c0 = arith.constant 0 : index
    %c0_0 = arith.constant 0 : index
    %0 = vector.load %arg1[%c0, %c0_0] : memref<41x128xf32, #tpu.memory_space<vmem>>, vector<8x128xf32>
    %c8 = arith.constant 8 : index
    %c0_1 = arith.constant 0 : index
    %1 = vector.load %arg1[%c8, %c0_1] : memref<41x128xf32, #tpu.memory_space<vmem>>, vector<32x128xf32>
    %c40 = arith.constant 40 : index
    %c0_2 = arith.constant 0 : index
    %2 = vector.load %arg1[%c40, %c0_2] : memref<41x128xf32, #tpu.memory_space<vmem>>, vector<1x128xf32>
    %c0_3 = arith.constant 0 : index
    %c0_4 = arith.constant 0 : index
    %3 = vector.load %arg0[%c0_3, %c0_4] : memref<64x8xf32, #tpu.memory_space<vmem>>, vector<64x8xf32>
    %cst = arith.constant dense<0.000000e+00> : vector<64x128xf32>
    %4 = tpu.matmul %3, %0, %cst {dimension_numbers = #tpu.dot_dimension_numbers<[1], [0], [0], [1], [0, 0, 1, 1], [], []>} : vector<64x8xf32>, vector<8x128xf32>, vector<64x128xf32> -> vector<64x128xf32>
    %5 = vector.broadcast %2 : vector<1x128xf32> to vector<64x128xf32>
    %6 = arith.addf %4, %5 : vector<64x128xf32>
    %cst_5 = arith.constant 0.000000e+00 : f32
    %7 = vector.broadcast %cst_5 : f32 to vector<8x32xf32>
    %cst_6 = arith.constant 0.000000e+00 : f32
    %8 = vector.broadcast %cst_6 : f32 to vector<8x32xf32>
    %9 = vector.extract_strided_slice %6 {offsets = [0, 0], sizes = [8, 128], strides = [1, 1]} : vector<64x128xf32> to vector<8x128xf32>
    %cst_7 = arith.constant dense<0.000000e+00> : vector<8x128xf32>
    %10 = tpu.matmul %7, %1, %cst_7 {dimension_numbers = #tpu.dot_dimension_numbers<[1], [0], [0], [1], [0, 0, 1, 1], [], []>} : vector<8x32xf32>, vector<32x128xf32>, vector<8x128xf32> -> vector<8x128xf32>
    %11 = arith.addf %9, %10 : vector<8x128xf32>
    %12 = arith.negf %11 : vector<8x128xf32>
    %13 = math.exp %12 : vector<8x128xf32>
    %cst_8 = arith.constant 1.000000e+00 : f32
    %14 = vector.broadcast %cst_8 : f32 to vector<8x128xf32>
    %15 = arith.addf %14, %13 : vector<8x128xf32>
    %16 = arith.divf %14, %15 : vector<8x128xf32>
    %17 = math.tanh %11 : vector<8x128xf32>
    %18 = vector.extract_strided_slice %16 {offsets = [0, 0], sizes = [8, 32], strides = [1, 1]} : vector<8x128xf32> to vector<8x32xf32>
    %19 = vector.extract_strided_slice %16 {offsets = [0, 32], sizes = [8, 32], strides = [1, 1]} : vector<8x128xf32> to vector<8x32xf32>
    %20 = vector.extract_strided_slice %17 {offsets = [0, 64], sizes = [8, 32], strides = [1, 1]} : vector<8x128xf32> to vector<8x32xf32>
    %21 = vector.extract_strided_slice %16 {offsets = [0, 96], sizes = [8, 32], strides = [1, 1]} : vector<8x128xf32> to vector<8x32xf32>
    %22 = arith.mulf %19, %8 : vector<8x32xf32>
    %23 = arith.mulf %18, %20 : vector<8x32xf32>
    %24 = arith.addf %22, %23 : vector<8x32xf32>
    %25 = math.tanh %24 : vector<8x32xf32>
    %26 = arith.mulf %21, %25 : vector<8x32xf32>
    %c0_9 = arith.constant 0 : index
    %c0_10 = arith.constant 0 : index
    %27 = vector.load %arg4[%c0_9, %c0_10] : memref<64x32xf32, #tpu.memory_space<vmem>>, vector<8x32xf32>
    tpu.vector_store %arg4[%c0_9, %c0_10], %26 {strides = array<i32>} : memref<64x32xf32, #tpu.memory_space<vmem>>, vector<8x32xf32>,
    %28 = vector.extract_strided_slice %6 {offsets = [8, 0], sizes = [8, 128], strides = [1, 1]} : vector<64x128xf32> to vector<8x128xf32>
    %cst_11 = arith.constant dense<0.000000e+00> : vector<8x128xf32>
    %29 = tpu.matmul %26, %1, %cst_11 {dimension_numbers = #tpu.dot_dimension_numbers<[1], [0], [0], [1], [0, 0, 1, 1], [], []>} : vector<8x32xf32>, vector<32x128xf32>, vector<8x128xf32> -> vector<8x128xf32>
    %30 = arith.addf %28, %29 : vector<8x128xf32>
    %31 = arith.negf %30 : vector<8x128xf32>
    %32 = math.exp %31 : vector<8x128xf32>
    %cst_12 = arith.constant 1.000000e+00 : f32
    %33 = vector.broadcast %cst_12 : f32 to vector<8x128xf32>
    %34 = arith.addf %33, %32 : vector<8x128xf32>
    %35 = arith.divf %33, %34 : vector<8x128xf32>
    %36 = math.tanh %30 : vector<8x128xf32>
    %37 = vector.extract_strided_slice %35 {offsets = [0, 0], sizes = [8, 32], strides = [1, 1]} : vector<8x128xf32> to vector<8x32xf32>
    %38 = vector.extract_strided_slice %35 {offsets = [0, 32], sizes = [8, 32], strides = [1, 1]} : vector<8x128xf32> to vector<8x32xf32>
    %39 = vector.extract_strided_slice %36 {offsets = [0, 64], sizes = [8, 32], strides = [1, 1]} : vector<8x128xf32> to vector<8x32xf32>
    %40 = vector.extract_strided_slice %35 {offsets = [0, 96], sizes = [8, 32], strides = [1, 1]} : vector<8x128xf32> to vector<8x32xf32>
    %41 = arith.mulf %38, %24 : vector<8x32xf32>
    %42 = arith.mulf %37, %39 : vector<8x32xf32>
    %43 = arith.addf %41, %42 : vector<8x32xf32>
    %44 = math.tanh %43 : vector<8x32xf32>
    %45 = arith.mulf %40, %44 : vector<8x32xf32>
    %c8_13 = arith.constant 8 : index
    %c0_14 = arith.constant 0 : index
    %46 = vector.load %arg4[%c8_13, %c0_14] : memref<64x32xf32, #tpu.memory_space<vmem>>, vector<8x32xf32>
    tpu.vector_store %arg4[%c8_13, %c0_14], %45 {strides = array<i32>} : memref<64x32xf32, #tpu.memory_space<vmem>>, vector<8x32xf32>,
    %47 = vector.extract_strided_slice %6 {offsets = [16, 0], sizes = [8, 128], strides = [1, 1]} : vector<64x128xf32> to vector<8x128xf32>
    %cst_15 = arith.constant dense<0.000000e+00> : vector<8x128xf32>
    %48 = tpu.matmul %45, %1, %cst_15 {dimension_numbers = #tpu.dot_dimension_numbers<[1], [0], [0], [1], [0, 0, 1, 1], [], []>} : vector<8x32xf32>, vector<32x128xf32>, vector<8x128xf32> -> vector<8x128xf32>
    %49 = arith.addf %47, %48 : vector<8x128xf32>
    %50 = arith.negf %49 : vector<8x128xf32>
    %51 = math.exp %50 : vector<8x128xf32>
    %cst_16 = arith.constant 1.000000e+00 : f32
    %52 = vector.broadcast %cst_16 : f32 to vector<8x128xf32>
    %53 = arith.addf %52, %51 : vector<8x128xf32>
    %54 = arith.divf %52, %53 : vector<8x128xf32>
    %55 = math.tanh %49 : vector<8x128xf32>
    %56 = vector.extract_strided_slice %54 {offsets = [0, 0], sizes = [8, 32], strides = [1, 1]} : vector<8x128xf32> to vector<8x32xf32>
    %57 = vector.extract_strided_slice %54 {offsets = [0, 32], sizes = [8, 32], strides = [1, 1]} : vector<8x128xf32> to vector<8x32xf32>
    %58 = vector.extract_strided_slice %55 {offsets = [0, 64], sizes = [8, 32], strides = [1, 1]} : vector<8x128xf32> to vector<8x32xf32>
    %59 = vector.extract_strided_slice %54 {offsets = [0, 96], sizes = [8, 32], strides = [1, 1]} : vector<8x128xf32> to vector<8x32xf32>
    %60 = arith.mulf %57, %43 : vector<8x32xf32>
    %61 = arith.mulf %56, %58 : vector<8x32xf32>
    %62 = arith.addf %60, %61 : vector<8x32xf32>
    %63 = math.tanh %62 : vector<8x32xf32>
    %64 = arith.mulf %59, %63 : vector<8x32xf32>
    %c16 = arith.constant 16 : index
    %c0_17 = arith.constant 0 : index
    %65 = vector.load %arg4[%c16, %c0_17] : memref<64x32xf32, #tpu.memory_space<vmem>>, vector<8x32xf32>
    tpu.vector_store %arg4[%c16, %c0_17], %64 {strides = array<i32>} : memref<64x32xf32, #tpu.memory_space<vmem>>, vector<8x32xf32>,
    %66 = vector.extract_strided_slice %6 {offsets = [24, 0], sizes = [8, 128], strides = [1, 1]} : vector<64x128xf32> to vector<8x128xf32>
    %cst_18 = arith.constant dense<0.000000e+00> : vector<8x128xf32>
    %67 = tpu.matmul %64, %1, %cst_18 {dimension_numbers = #tpu.dot_dimension_numbers<[1], [0], [0], [1], [0, 0, 1, 1], [], []>} : vector<8x32xf32>, vector<32x128xf32>, vector<8x128xf32> -> vector<8x128xf32>
    %68 = arith.addf %66, %67 : vector<8x128xf32>
    %69 = arith.negf %68 : vector<8x128xf32>
    %70 = math.exp %69 : vector<8x128xf32>
    %cst_19 = arith.constant 1.000000e+00 : f32
    %71 = vector.broadcast %cst_19 : f32 to vector<8x128xf32>
    %72 = arith.addf %71, %70 : vector<8x128xf32>
    %73 = arith.divf %71, %72 : vector<8x128xf32>
    %74 = math.tanh %68 : vector<8x128xf32>
    %75 = vector.extract_strided_slice %73 {offsets = [0, 0], sizes = [8, 32], strides = [1, 1]} : vector<8x128xf32> to vector<8x32xf32>
    %76 = vector.extract_strided_slice %73 {offsets = [0, 32], sizes = [8, 32], strides = [1, 1]} : vector<8x128xf32> to vector<8x32xf32>
    %77 = vector.extract_strided_slice %74 {offsets = [0, 64], sizes = [8, 32], strides = [1, 1]} : vector<8x128xf32> to vector<8x32xf32>
    %78 = vector.extract_strided_slice %73 {offsets = [0, 96], sizes = [8, 32], strides = [1, 1]} : vector<8x128xf32> to vector<8x32xf32>
    %79 = arith.mulf %76, %62 : vector<8x32xf32>
    %80 = arith.mulf %75, %77 : vector<8x32xf32>
    %81 = arith.addf %79, %80 : vector<8x32xf32>
    %82 = math.tanh %81 : vector<8x32xf32>
    %83 = arith.mulf %78, %82 : vector<8x32xf32>
    %c24 = arith.constant 24 : index
    %c0_20 = arith.constant 0 : index
    %84 = vector.load %arg4[%c24, %c0_20] : memref<64x32xf32, #tpu.memory_space<vmem>>, vector<8x32xf32>
    tpu.vector_store %arg4[%c24, %c0_20], %83 {strides = array<i32>} : memref<64x32xf32, #tpu.memory_space<vmem>>, vector<8x32xf32>,
    %85 = vector.extract_strided_slice %6 {offsets = [32, 0], sizes = [8, 128], strides = [1, 1]} : vector<64x128xf32> to vector<8x128xf32>
    %cst_21 = arith.constant dense<0.000000e+00> : vector<8x128xf32>
    %86 = tpu.matmul %83, %1, %cst_21 {dimension_numbers = #tpu.dot_dimension_numbers<[1], [0], [0], [1], [0, 0, 1, 1], [], []>} : vector<8x32xf32>, vector<32x128xf32>, vector<8x128xf32> -> vector<8x128xf32>
    %87 = arith.addf %85, %86 : vector<8x128xf32>
    %88 = arith.negf %87 : vector<8x128xf32>
    %89 = math.exp %88 : vector<8x128xf32>
    %cst_22 = arith.constant 1.000000e+00 : f32
    %90 = vector.broadcast %cst_22 : f32 to vector<8x128xf32>
    %91 = arith.addf %90, %89 : vector<8x128xf32>
    %92 = arith.divf %90, %91 : vector<8x128xf32>
    %93 = math.tanh %87 : vector<8x128xf32>
    %94 = vector.extract_strided_slice %92 {offsets = [0, 0], sizes = [8, 32], strides = [1, 1]} : vector<8x128xf32> to vector<8x32xf32>
    %95 = vector.extract_strided_slice %92 {offsets = [0, 32], sizes = [8, 32], strides = [1, 1]} : vector<8x128xf32> to vector<8x32xf32>
    %96 = vector.extract_strided_slice %93 {offsets = [0, 64], sizes = [8, 32], strides = [1, 1]} : vector<8x128xf32> to vector<8x32xf32>
    %97 = vector.extract_strided_slice %92 {offsets = [0, 96], sizes = [8, 32], strides = [1, 1]} : vector<8x128xf32> to vector<8x32xf32>
    %98 = arith.mulf %95, %81 : vector<8x32xf32>
    %99 = arith.mulf %94, %96 : vector<8x32xf32>
    %100 = arith.addf %98, %99 : vector<8x32xf32>
    %101 = math.tanh %100 : vector<8x32xf32>
    %102 = arith.mulf %97, %101 : vector<8x32xf32>
    %c32 = arith.constant 32 : index
    %c0_23 = arith.constant 0 : index
    %103 = vector.load %arg4[%c32, %c0_23] : memref<64x32xf32, #tpu.memory_space<vmem>>, vector<8x32xf32>
    tpu.vector_store %arg4[%c32, %c0_23], %102 {strides = array<i32>} : memref<64x32xf32, #tpu.memory_space<vmem>>, vector<8x32xf32>,
    %104 = vector.extract_strided_slice %6 {offsets = [40, 0], sizes = [8, 128], strides = [1, 1]} : vector<64x128xf32> to vector<8x128xf32>
    %cst_24 = arith.constant dense<0.000000e+00> : vector<8x128xf32>
    %105 = tpu.matmul %102, %1, %cst_24 {dimension_numbers = #tpu.dot_dimension_numbers<[1], [0], [0], [1], [0, 0, 1, 1], [], []>} : vector<8x32xf32>, vector<32x128xf32>, vector<8x128xf32> -> vector<8x128xf32>
    %106 = arith.addf %104, %105 : vector<8x128xf32>
    %107 = arith.negf %106 : vector<8x128xf32>
    %108 = math.exp %107 : vector<8x128xf32>
    %cst_25 = arith.constant 1.000000e+00 : f32
    %109 = vector.broadcast %cst_25 : f32 to vector<8x128xf32>
    %110 = arith.addf %109, %108 : vector<8x128xf32>
    %111 = arith.divf %109, %110 : vector<8x128xf32>
    %112 = math.tanh %106 : vector<8x128xf32>
    %113 = vector.extract_strided_slice %111 {offsets = [0, 0], sizes = [8, 32], strides = [1, 1]} : vector<8x128xf32> to vector<8x32xf32>
    %114 = vector.extract_strided_slice %111 {offsets = [0, 32], sizes = [8, 32], strides = [1, 1]} : vector<8x128xf32> to vector<8x32xf32>
    %115 = vector.extract_strided_slice %112 {offsets = [0, 64], sizes = [8, 32], strides = [1, 1]} : vector<8x128xf32> to vector<8x32xf32>
    %116 = vector.extract_strided_slice %111 {offsets = [0, 96], sizes = [8, 32], strides = [1, 1]} : vector<8x128xf32> to vector<8x32xf32>
    %117 = arith.mulf %114, %100 : vector<8x32xf32>
    %118 = arith.mulf %113, %115 : vector<8x32xf32>
    %119 = arith.addf %117, %118 : vector<8x32xf32>
    %120 = math.tanh %119 : vector<8x32xf32>
    %121 = arith.mulf %116, %120 : vector<8x32xf32>
    %c40_26 = arith.constant 40 : index
    %c0_27 = arith.constant 0 : index
    %122 = vector.load %arg4[%c40_26, %c0_27] : memref<64x32xf32, #tpu.memory_space<vmem>>, vector<8x32xf32>
    tpu.vector_store %arg4[%c40_26, %c0_27], %121 {strides = array<i32>} : memref<64x32xf32, #tpu.memory_space<vmem>>, vector<8x32xf32>,
    %123 = vector.extract_strided_slice %6 {offsets = [48, 0], sizes = [8, 128], strides = [1, 1]} : vector<64x128xf32> to vector<8x128xf32>
    %cst_28 = arith.constant dense<0.000000e+00> : vector<8x128xf32>
    %124 = tpu.matmul %121, %1, %cst_28 {dimension_numbers = #tpu.dot_dimension_numbers<[1], [0], [0], [1], [0, 0, 1, 1], [], []>} : vector<8x32xf32>, vector<32x128xf32>, vector<8x128xf32> -> vector<8x128xf32>
    %125 = arith.addf %123, %124 : vector<8x128xf32>
    %126 = arith.negf %125 : vector<8x128xf32>
    %127 = math.exp %126 : vector<8x128xf32>
    %cst_29 = arith.constant 1.000000e+00 : f32
    %128 = vector.broadcast %cst_29 : f32 to vector<8x128xf32>
    %129 = arith.addf %128, %127 : vector<8x128xf32>
    %130 = arith.divf %128, %129 : vector<8x128xf32>
    %131 = math.tanh %125 : vector<8x128xf32>
    %132 = vector.extract_strided_slice %130 {offsets = [0, 0], sizes = [8, 32], strides = [1, 1]} : vector<8x128xf32> to vector<8x32xf32>
    %133 = vector.extract_strided_slice %130 {offsets = [0, 32], sizes = [8, 32], strides = [1, 1]} : vector<8x128xf32> to vector<8x32xf32>
    %134 = vector.extract_strided_slice %131 {offsets = [0, 64], sizes = [8, 32], strides = [1, 1]} : vector<8x128xf32> to vector<8x32xf32>
    %135 = vector.extract_strided_slice %130 {offsets = [0, 96], sizes = [8, 32], strides = [1, 1]} : vector<8x128xf32> to vector<8x32xf32>
    %136 = arith.mulf %133, %119 : vector<8x32xf32>
    %137 = arith.mulf %132, %134 : vector<8x32xf32>
    %138 = arith.addf %136, %137 : vector<8x32xf32>
    %139 = math.tanh %138 : vector<8x32xf32>
    %140 = arith.mulf %135, %139 : vector<8x32xf32>
    %c48 = arith.constant 48 : index
    %c0_30 = arith.constant 0 : index
    %141 = vector.load %arg4[%c48, %c0_30] : memref<64x32xf32, #tpu.memory_space<vmem>>, vector<8x32xf32>
    tpu.vector_store %arg4[%c48, %c0_30], %140 {strides = array<i32>} : memref<64x32xf32, #tpu.memory_space<vmem>>, vector<8x32xf32>,
    %142 = vector.extract_strided_slice %6 {offsets = [56, 0], sizes = [8, 128], strides = [1, 1]} : vector<64x128xf32> to vector<8x128xf32>
    %cst_31 = arith.constant dense<0.000000e+00> : vector<8x128xf32>
    %143 = tpu.matmul %140, %1, %cst_31 {dimension_numbers = #tpu.dot_dimension_numbers<[1], [0], [0], [1], [0, 0, 1, 1], [], []>} : vector<8x32xf32>, vector<32x128xf32>, vector<8x128xf32> -> vector<8x128xf32>
    %144 = arith.addf %142, %143 : vector<8x128xf32>
    %145 = arith.negf %144 : vector<8x128xf32>
    %146 = math.exp %145 : vector<8x128xf32>
    %cst_32 = arith.constant 1.000000e+00 : f32
    %147 = vector.broadcast %cst_32 : f32 to vector<8x128xf32>
    %148 = arith.addf %147, %146 : vector<8x128xf32>
    %149 = arith.divf %147, %148 : vector<8x128xf32>
    %150 = math.tanh %144 : vector<8x128xf32>
    %151 = vector.extract_strided_slice %149 {offsets = [0, 0], sizes = [8, 32], strides = [1, 1]} : vector<8x128xf32> to vector<8x32xf32>
    %152 = vector.extract_strided_slice %149 {offsets = [0, 32], sizes = [8, 32], strides = [1, 1]} : vector<8x128xf32> to vector<8x32xf32>
    %153 = vector.extract_strided_slice %150 {offsets = [0, 64], sizes = [8, 32], strides = [1, 1]} : vector<8x128xf32> to vector<8x32xf32>
    %154 = vector.extract_strided_slice %149 {offsets = [0, 96], sizes = [8, 32], strides = [1, 1]} : vector<8x128xf32> to vector<8x32xf32>
    %155 = arith.mulf %152, %138 : vector<8x32xf32>
    %156 = arith.mulf %151, %153 : vector<8x32xf32>
    %157 = arith.addf %155, %156 : vector<8x32xf32>
    %158 = math.tanh %157 : vector<8x32xf32>
    %159 = arith.mulf %154, %158 : vector<8x32xf32>
    %c56 = arith.constant 56 : index
    %c0_33 = arith.constant 0 : index
    %160 = vector.load %arg4[%c56, %c0_33] : memref<64x32xf32, #tpu.memory_space<vmem>>, vector<8x32xf32>
    tpu.vector_store %arg4[%c56, %c0_33], %159 {strides = array<i32>} : memref<64x32xf32, #tpu.memory_space<vmem>>, vector<8x32xf32>,
    %c0_34 = arith.constant 0 : index
    %c0_35 = arith.constant 0 : index
    %161 = vector.load %arg2[%c0_34, %c0_35] : memref<33x128xf32, #tpu.memory_space<vmem>>, vector<32x128xf32>
    %c32_36 = arith.constant 32 : index
    %c0_37 = arith.constant 0 : index
    %162 = vector.load %arg2[%c32_36, %c0_37] : memref<33x128xf32, #tpu.memory_space<vmem>>, vector<1x128xf32>
    %c0_38 = arith.constant 0 : index
    %c0_39 = arith.constant 0 : index
    %163 = vector.load %arg4[%c0_38, %c0_39] : memref<64x32xf32, #tpu.memory_space<vmem>>, vector<64x32xf32>
    %cst_40 = arith.constant dense<0.000000e+00> : vector<64x128xf32>
    %164 = tpu.matmul %163, %161, %cst_40 {dimension_numbers = #tpu.dot_dimension_numbers<[1], [0], [0], [1], [0, 0, 1, 1], [], []>} : vector<64x32xf32>, vector<32x128xf32>, vector<64x128xf32> -> vector<64x128xf32>
    %165 = vector.broadcast %162 : vector<1x128xf32> to vector<64x128xf32>
    %166 = arith.addf %164, %165 : vector<64x128xf32>
    %cst_41 = arith.constant 0.000000e+00 : f32
    %167 = vector.broadcast %cst_41 : f32 to vector<64x128xf32>
    %168 = arith.maximumf %166, %167 : vector<64x128xf32>
    %169 = vector.extract_strided_slice %168 {offsets = [0, 0], sizes = [8, 128], strides = [1, 1]} : vector<64x128xf32> to vector<8x128xf32>
    %c0_42 = arith.constant 0 : index
    %c0_43 = arith.constant 0 : index
    %170 = vector.load %arg3[%c0_42, %c0_43] : memref<8x1024xf32, #tpu.memory_space<vmem>>, vector<8x128xf32>
    tpu.vector_store %arg3[%c0_42, %c0_43], %169 {strides = array<i32>} : memref<8x1024xf32, #tpu.memory_space<vmem>>, vector<8x128xf32>,
    %171 = vector.extract_strided_slice %168 {offsets = [8, 0], sizes = [8, 128], strides = [1, 1]} : vector<64x128xf32> to vector<8x128xf32>
    %c0_44 = arith.constant 0 : index
    %c128 = arith.constant 128 : index
    %172 = vector.load %arg3[%c0_44, %c128] : memref<8x1024xf32, #tpu.memory_space<vmem>>, vector<8x128xf32>
    tpu.vector_store %arg3[%c0_44, %c128], %171 {strides = array<i32>} : memref<8x1024xf32, #tpu.memory_space<vmem>>, vector<8x128xf32>,
    %173 = vector.extract_strided_slice %168 {offsets = [16, 0], sizes = [8, 128], strides = [1, 1]} : vector<64x128xf32> to vector<8x128xf32>
    %c0_45 = arith.constant 0 : index
    %c256 = arith.constant 256 : index
    %174 = vector.load %arg3[%c0_45, %c256] : memref<8x1024xf32, #tpu.memory_space<vmem>>, vector<8x128xf32>
    tpu.vector_store %arg3[%c0_45, %c256], %173 {strides = array<i32>} : memref<8x1024xf32, #tpu.memory_space<vmem>>, vector<8x128xf32>,
    %175 = vector.extract_strided_slice %168 {offsets = [24, 0], sizes = [8, 128], strides = [1, 1]} : vector<64x128xf32> to vector<8x128xf32>
    %c0_46 = arith.constant 0 : index
    %c384 = arith.constant 384 : index
    %176 = vector.load %arg3[%c0_46, %c384] : memref<8x1024xf32, #tpu.memory_space<vmem>>, vector<8x128xf32>
    tpu.vector_store %arg3[%c0_46, %c384], %175 {strides = array<i32>} : memref<8x1024xf32, #tpu.memory_space<vmem>>, vector<8x128xf32>,
    %177 = vector.extract_strided_slice %168 {offsets = [32, 0], sizes = [8, 128], strides = [1, 1]} : vector<64x128xf32> to vector<8x128xf32>
    %c0_47 = arith.constant 0 : index
    %c512 = arith.constant 512 : index
    %178 = vector.load %arg3[%c0_47, %c512] : memref<8x1024xf32, #tpu.memory_space<vmem>>, vector<8x128xf32>
    tpu.vector_store %arg3[%c0_47, %c512], %177 {strides = array<i32>} : memref<8x1024xf32, #tpu.memory_space<vmem>>, vector<8x128xf32>,
    %179 = vector.extract_strided_slice %168 {offsets = [40, 0], sizes = [8, 128], strides = [1, 1]} : vector<64x128xf32> to vector<8x128xf32>
    %c0_48 = arith.constant 0 : index
    %c640 = arith.constant 640 : index
    %180 = vector.load %arg3[%c0_48, %c640] : memref<8x1024xf32, #tpu.memory_space<vmem>>, vector<8x128xf32>
    tpu.vector_store %arg3[%c0_48, %c640], %179 {strides = array<i32>} : memref<8x1024xf32, #tpu.memory_space<vmem>>, vector<8x128xf32>,
    %181 = vector.extract_strided_slice %168 {offsets = [48, 0], sizes = [8, 128], strides = [1, 1]} : vector<64x128xf32> to vector<8x128xf32>
    %c0_49 = arith.constant 0 : index
    %c768 = arith.constant 768 : index
    %182 = vector.load %arg3[%c0_49, %c768] : memref<8x1024xf32, #tpu.memory_space<vmem>>, vector<8x128xf32>
    tpu.vector_store %arg3[%c0_49, %c768], %181 {strides = array<i32>} : memref<8x1024xf32, #tpu.memory_space<vmem>>, vector<8x128xf32>,
    %183 = vector.extract_strided_slice %168 {offsets = [56, 0], sizes = [8, 128], strides = [1, 1]} : vector<64x128xf32> to vector<8x128xf32>
    %c0_50 = arith.constant 0 : index
    %c896 = arith.constant 896 : index
    %184 = vector.load %arg3[%c0_50, %c896] : memref<8x1024xf32, #tpu.memory_space<vmem>>, vector<8x128xf32>
    tpu.vector_store %arg3[%c0_50, %c896], %183 {strides = array<i32>} : memref<8x1024xf32, #tpu.memory_space<vmem>>, vector<8x128xf32>,
    return
  }
}

</mosaic_0001>

<bundles_post_ra>
// kernel: demand_lstm_forward.1
= control target key start
LH: loop header
LB: loop body
LE: loop exit
PB: predicated region body
PF: predicated region fallthrough
CT: control target
= control target key end

     0   :  { %vm32_vm0 = vcmask 64512   ;;  %v1432_v5 = vmov 0.0   ;;  %vm1433_vm1 = vmmov 0   ;;  %s1434_s9 = smov 64   ;;  %vm162_vm2 = vcmask 261120   ;;  %s1725_s1 = inlined_call_operand.vmem [shape: f32[41,128], index: 1, kind: input, shape index: {}]   ;;  %s1726_s0 = inlined_call_operand.vmem [shape: f32[64,8], index: 0, kind: input, shape index: {}]   ;;  %s1727_s2 = inlined_call_operand.vmem [shape: f32[33,128], index: 2, kind: input, shape index: {}]   ;;  %s1728_s3 = inlined_call_operand.vmem [shape: f32[8,1024], index: 3, kind: output, shape index: {}]  }
   0x1   :  { %v14_v0 = vld [vmem:[%s1725_s1] sm:$0xff]  ;;  %v25_v2 = vld [vmem:[%s1726_s0 + $0x28] sm:$0xff]  ;;  %v26_v7 = vld [vmem:[%s1726_s0 + $0x30] sm:$0xff] }
   0x2   :  { %v24_v1 = vld [vmem:[%s1726_s0 + $0x20] sm:$0xff]  ;;  %1362 = vmatprep.subr.mxu1 %v14_v0  ;;  %1240 = vmatprep.subr.mxu0 %v14_v0  ;;  %v21_v6 = vld [vmem:[%s1726_s0 + $0x8] sm:$0xff]  ;;  %v1486_v8 = vld [vmem:[%s1725_s1 + $0x18] sm:$0xff] }
   0x3   :  { %1248 = vmatprep.mubr.msk.f32.mxu1 %vm32_vm0, %v24_v1  ;;  %v1469_v3 = vld [vmem:[%s1725_s1 + $0x20] sm:$0xff]  ;;  %1363 = vmatpush3.msra.mxu1 %v14_v0  ;;  %v27_v9 = vld [vmem:[%s1726_s0 + $0x38] sm:$0xff]  ;;  %v1498_v10 = vld [vmem:[%s1725_s1 + $0x10] sm:$0xff] }
   0x4   :  { %v20_v4 = vld [vmem:[%s1726_s0] sm:$0xff]  ;;  %1249 = vmatmul.mubr.msk.f32.vlgmr.msra.gmra.mxu1 %vm32_vm0, %v25_v2  ;;  %1254 = vmatprep.subr.mxu1 %v1432_v5  ;;  %v1507_v11 = vld [vmem:[%s1725_s1 + $0x8] sm:$0xff]  ;;  %v22_v51 = vld [vmem:[%s1726_s0 + $0x10] sm:$0xff] }
   0x5   :  { %1255 = vmatpush3.msra.mxu1 %v1469_v3  ;;  %1241 = vmatpush3.msra.mxu0 %v14_v0  ;;  %v1543_v17 = vld [vmem:[%s1725_s1 + $0x28] ss:$0 sm:$0xff]  ;;  %s1435_s1 = smov 32   ;;  %v23_v52 = vld [vmem:[%s1726_s0 + $0x18] sm:$0xff] }
   0x6   :  { %1242 = vmatprep.mubr.msk.f32.mxu0 %vm32_vm0, %v20_v4  ;;  %1256 = vmatprep.subr.mxu1 %v1432_v5 }
   0x7   :  { %1243 = vmatmul.mubr.msk.f32.vlgmr.msra.gmra.mxu0 %vm32_vm0, %v21_v6  ;;  %1251 = vmatprep.mubr.msk.f32.mxu1 %vm32_vm0, %v26_v7 }
   0x8   :  { %1257 = vmatpush3.msra.mxu1 %v1486_v8  ;;  %1276 = vmatprep.subr.mxu0 %v1432_v5 }
   0x9   :  { %1252 = vmatmul.mubr.msk.f32.gmra.mxu1 %vm32_vm0, %v27_v9  ;;  %1258 = vmatprep.subr.mxu1 %v1432_v5 }
   0xa   :  { %1259 = vmatpush3.msra.mxu1 %v1498_v10  ;;  %1262 = vmatprep.mubr.msk.f32.mxu1 %vm1433_vm1, %v1432_v5 }
   0xb   :  { %1260 = vmatprep.subr.mxu1 %v1432_v5  ;;  %1277 = vmatpush3.msra.mxu0 %v1469_v3 }
   0xc   :  { %1261 = vmatpush3.msra.mxu1 %v1507_v11  ;;  %1278 = vmatprep.subr.mxu0 %v1432_v5 }
   0xd   :  { %1263 = vmatmul.mubr.f32.vlgmr.msra.gmra.mxu1 %v1432_v5  ;;  %1265 = vmatprep.subr.mxu1 %v1432_v5 }
   0xe   :  { %1266 = vmatpush3.msra.mxu1 %v1469_v3  ;;  %1273 = vmatprep.mubr.msk.f32.mxu1 %vm1433_vm1, %v1432_v5 }
   0xf   :  { %1267 = vmatprep.subr.mxu1 %v1432_v5  ;;  %1279 = vmatpush3.msra.mxu0 %v1486_v8 }
  0x10   :  { %1268 = vmatpush3.msra.mxu1 %v1486_v8  ;;  %1280 = vmatprep.subr.mxu0 %v1432_v5 }
  0x11   :  { %1269 = vmatprep.subr.mxu1 %v1432_v5  ;;  %1281 = vmatpush3.msra.mxu0 %v1498_v10 }
  0x12   :  { %1270 = vmatpush3.msra.mxu1 %v1498_v10  ;;  %1282 = vmatprep.subr.mxu0 %v1432_v5 }
  0x13   :  { %1271 = vmatprep.subr.mxu1 %v1432_v5  ;;  %1283 = vmatpush3.msra.mxu0 %v1507_v11 }
  0x14   :  { %1272 = vmatpush3.msra.mxu1 %v1507_v11  ;;  %1298 = vmatprep.subr.mxu0 %v1432_v5 }
  0x15   :  { %1287 = vmatprep.subr.mxu1 %v1432_v5  ;;  %1245 = vmatprep.mubr.msk.f32.mxu0 %vm32_vm0, %v22_v51 }
  0x16   :  { %1246 = vmatmul.mubr.msk.f32.gmra.mxu0 %vm32_vm0, %v23_v52 }
  0x17   :  { %1284 = vmatprep.mubr.msk.f32.mxu0 %vm1433_vm1, %v1432_v5 }
  0xc4   :  { %v1534_v12 = vpop.f32.mrf.mxu1 }
  0xc6   :  { %v1536_v13 = vpop.f32.mrf.mxu1 }
  0xc7   :  { %v1244_v14 = vpop.f32.mrf.mxu0 }
  0xc8   :  { %v129_v37 = vadd.f32 %v1244_v14, %v1543_v17 }
  0xc9   :  { %v1538_v15 = vpop.f32.mrf.mxu1  ;;  %v123_v16 = vpop.f32.mrf.mxu0 }
  0xca   :  { %v124_v19 = vadd.f32 %v1543_v17, %v123_v16 }
  0xcb   :  { %v1545_v18 = vpop.f32.mrf.mxu1 }
  0xcd   :  { %v232_v20 = vpop.f32.mrf.mxu1 }
  0xce   :  { %v236_v21 = vadd.f32 %v232_v20, %v124_v19 }
  0xcf   :  { %v1264_v22 = vpop.f32.mrf.mxu1 }
  0xd0   :  { %1368 = vtanh.f32 %v236_v21  ;;  %v1155_v24 = vmul.f32 -1.442695, %v236_v21 }
  0xd2   :  { %1370 = vpow2.f32 %v1155_v24 }
  0xd6   :  { %v1247_v57 = vpop.f32.mrf.mxu0 }
  0xd8   :  { %v133_v58 = vpop.f32.mrf.mxu0 }
  0xd9   :  { %v134_v59 = vadd.f32 %v1543_v17, %v133_v58  ;;  %v149_v58 = vadd.f32 %v1534_v12, %v1543_v17 }
  0xdd   :  { %v1369_v23 = vpop.eup %1368 }
  0xde   :  { %246 = vrot.lane.b32.xlu0 %v1369_v23, %s1434_s9  ;;  %v139_v23 = vadd.f32 %v1247_v57, %v1543_v17 }
  0xdf   :  { %v1371_v25 = vpop.eup %1370 }
  0xe0   :  { %v240_v26 = vadd.f32 1.0, %v1371_v25 }
  0xe2   :  { %1372 = vrcp.f32 %v240_v26 }
  0xef   :  { %v1373_v27 = vpop.eup %1372 }
  0xf0   :  { %v244_v30 = vmul.f32 0.0, %v1373_v27 }
 0x150   :  { %v247_v28 = vpop.permute.xlu0 %246 }
 0x151   :  { %v249_v29 = vmul.f32 %v1373_v27, %v247_v28 }
 0x153   :  { %251 = vrot.lane.b32.xlu0 %v249_v29, %s1435_s1 }
 0x1c5   :  { %v252_v31 = vpop.permute.xlu0 %251 }
 0x1c6   :  { %v254_v32 = vadd.f32 %v252_v31, %v244_v30 }
 0x1c8   :  { %1374 = vtanh.f32 %v254_v32 }
 0x1d5   :  { %v1375_v33 = vpop.eup %1374 }
 0x1d6   :  { %257 = vrot.lane.b32.xlu1 %v1375_v33, %s1434_s9 }
 0x248   :  { %v258_v34 = vpop.permute.xlu1 %257 }
 0x249   :  { %v260_v35 = vmul.f32 %v1373_v27, %v258_v34 }
 0x24b   :  { %262 = vrot.lane.b32.xlu1 %v260_v35, %s1435_s1 }
 0x2bd   :  { %v263_v36 = vpop.permute.xlu1 %262 }
 0x2be   :  { %265 = vst.msk [vmem:[#allocation2] sm:$0xff] %vm162_vm2, %v263_v36  ;;  %1274 = vmatmul.mubr.msk.f32.vlgmr.msra.gmra.mxu1 %vm162_vm2, %v263_v36 }
 0x2bf   :  { %1288 = vmatpush3.msra.mxu1 %v1469_v3  ;;  %1295 = vmatprep.mubr.msk.f32.mxu1 %vm1433_vm1, %v1432_v5 }
 0x2c0   :  { %1289 = vmatprep.subr.mxu1 %v1432_v5 }
 0x2c1   :  { %1290 = vmatpush3.msra.mxu1 %v1486_v8 }
 0x2c2   :  { %1291 = vmatprep.subr.mxu1 %v1432_v5 }
 0x2c3   :  { %1292 = vmatpush3.msra.mxu1 %v1498_v10 }
 0x2c4   :  { %1293 = vmatprep.subr.mxu1 %v1432_v5 }
 0x2c5   :  { %1294 = vmatpush3.msra.mxu1 %v1507_v11 }
 0x2c6   :  { %1309 = vmatprep.subr.mxu1 %v1432_v5 }
 0x37e   :  { %v334_v38 = vpop.f32.mrf.mxu1 }
 0x37f   :  { %v338_v39 = vadd.f32 %v334_v38, %v129_v37 }
 0x380   :  { %v1275_v40 = vpop.f32.mrf.mxu1 }
 0x381   :  { %1376 = vtanh.f32 %v338_v39  ;;  %v1157_v42 = vmul.f32 -1.442695, %v338_v39 }
 0x383   :  { %1378 = vpow2.f32 %v1157_v42 }
 0x38e   :  { %v1377_v41 = vpop.eup %1376 }
 0x38f   :  { %348 = vrot.lane.b32.xlu0 %v1377_v41, %s1434_s9  ;;  %v144_v41 = vadd.f32 %v1543_v17, %v1536_v13 }
 0x390   :  { %v1379_v43 = vpop.eup %1378 }
 0x391   :  { %v342_v44 = vadd.f32 1.0, %v1379_v43 }
 0x393   :  { %1380 = vrcp.f32 %v342_v44 }
 0x3a0   :  { %v1381_v45 = vpop.eup %1380 }
 0x3a1   :  { %v346_v48 = vmul.f32 %v1381_v45, %v254_v32 }
 0x401   :  { %v349_v46 = vpop.permute.xlu0 %348 }
 0x402   :  { %v351_v47 = vmul.f32 %v1381_v45, %v349_v46 }
 0x404   :  { %353 = vrot.lane.b32.xlu1 %v351_v47, %s1435_s1 }
 0x476   :  { %v354_v49 = vpop.permute.xlu1 %353 }
 0x477   :  { %v356_v50 = vadd.f32 %v354_v49, %v346_v48 }
 0x479   :  { %1382 = vtanh.f32 %v356_v50 }
 0x486   :  { %v1383_v53 = vpop.eup %1382 }
 0x487   :  { %359 = vrot.lane.b32.xlu0 %v1383_v53, %s1434_s9 }
 0x4f9   :  { %v360_v54 = vpop.permute.xlu0 %359 }
 0x4fa   :  { %v362_v55 = vmul.f32 %v1381_v45, %v360_v54 }
 0x4fc   :  { %364 = vrot.lane.b32.xlu1 %v362_v55, %s1435_s1 }
 0x56e   :  { %v365_v56 = vpop.permute.xlu1 %364 }
 0x56f   :  { %367 = vst.msk [vmem:[#allocation2 + $0x8] sm:$0xff] %vm162_vm2, %v365_v56  ;;  %1285 = vmatmul.mubr.msk.f32.vlgmr.msra.gmra.mxu0 %vm162_vm2, %v365_v56 }
 0x570   :  { %1299 = vmatpush3.msra.mxu0 %v1469_v3  ;;  %1306 = vmatprep.mubr.msk.f32.mxu0 %vm1433_vm1, %v1432_v5 }
 0x571   :  { %1300 = vmatprep.subr.mxu0 %v1432_v5 }
 0x572   :  { %1301 = vmatpush3.msra.mxu0 %v1486_v8 }
 0x573   :  { %1302 = vmatprep.subr.mxu0 %v1432_v5 }
 0x574   :  { %1303 = vmatpush3.msra.mxu0 %v1498_v10 }
 0x575   :  { %1304 = vmatprep.subr.mxu0 %v1432_v5 }
 0x576   :  { %1305 = vmatpush3.msra.mxu0 %v1507_v11 }
 0x577   :  { %1320 = vmatprep.subr.mxu0 %v1432_v5 }
 0x62f   :  { %v436_v60 = vpop.f32.mrf.mxu0 }
 0x630   :  { %v440_v61 = vadd.f32 %v436_v60, %v134_v59 }
 0x631   :  { %v1286_v62 = vpop.f32.mrf.mxu0 }
 0x632   :  { %1384 = vtanh.f32 %v440_v61  ;;  %v1159_v0 = vmul.f32 -1.442695, %v440_v61 }
 0x634   :  { %1386 = vpow2.f32 %v1159_v0 }
 0x63f   :  { %v1385_v63 = vpop.eup %1384 }
 0x640   :  { %450 = vrot.lane.b32.xlu0 %v1385_v63, %s1434_s9 }
 0x641   :  { %v1387_v1 = vpop.eup %1386 }
 0x642   :  { %v444_v2 = vadd.f32 1.0, %v1387_v1 }
 0x644   :  { %1388 = vrcp.f32 %v444_v2  ;;  %v983_v2 = vld [vmem:[%s1727_s2 + $0x18] sm:$0xff] }
 0x651   :  { %v1389_v4 = vpop.eup %1388 }
 0x652   :  { %v448_v9 = vmul.f32 %v1389_v4, %v356_v50 }
 0x6b2   :  { %v451_v6 = vpop.permute.xlu0 %450 }
 0x6b3   :  { %v453_v7 = vmul.f32 %v1389_v4, %v451_v6 }
 0x6b5   :  { %455 = vrot.lane.b32.xlu1 %v453_v7, %s1435_s1 }
 0x727   :  { %v456_v14 = vpop.permute.xlu1 %455 }
 0x728   :  { %v458_v16 = vadd.f32 %v456_v14, %v448_v9  ;;  %v982_v14 = vld [vmem:[%s1727_s2 + $0x10] sm:$0xff] }
 0x72a   :  { %1390 = vtanh.f32 %v458_v16 }
 0x737   :  { %v1391_v19 = vpop.eup %1390 }
 0x738   :  { %461 = vrot.lane.b32.xlu0 %v1391_v19, %s1434_s9  ;;  %v981_v19 = vld [vmem:[%s1727_s2 + $0x8] sm:$0xff] }
 0x7aa   :  { %v462_v20 = vpop.permute.xlu0 %461 }
 0x7ab   :  { %v464_v21 = vmul.f32 %v1389_v4, %v462_v20  ;;  %v980_v20 = vld [vmem:[%s1727_s2] sm:$0xff] }
 0x7ad   :  { %466 = vrot.lane.b32.xlu1 %v464_v21, %s1435_s1  ;;  %v986_v21 = vld [vmem:[#allocation2 + $0x8] sm:$0xff] }
 0x81f   :  { %v467_v22 = vpop.permute.xlu1 %466 }
 0x820   :  { %469 = vst.msk [vmem:[#allocation2 + $0x10] sm:$0xff] %vm162_vm2, %v467_v22  ;;  %1296 = vmatmul.mubr.msk.f32.vlgmr.msra.gmra.mxu1 %vm162_vm2, %v467_v22 }
 0x821   :  { %1310 = vmatpush3.msra.mxu1 %v1469_v3  ;;  %1317 = vmatprep.mubr.msk.f32.mxu1 %vm1433_vm1, %v1432_v5 }
 0x822   :  { %1311 = vmatprep.subr.mxu1 %v1432_v5 }
 0x823   :  { %1312 = vmatpush3.msra.mxu1 %v1486_v8 }
 0x824   :  { %1313 = vmatprep.subr.mxu1 %v1432_v5 }
 0x825   :  { %1314 = vmatpush3.msra.mxu1 %v1498_v10 }
 0x826   :  { %1315 = vmatprep.subr.mxu1 %v1432_v5 }
 0x827   :  { %1316 = vmatpush3.msra.mxu1 %v1507_v11  ;;  %v987_v22 = vld [vmem:[#allocation2 + $0x10] sm:$0xff] }
 0x828   :  { %1331 = vmatprep.subr.mxu1 %v1432_v5 }
 0x8e0   :  { %v538_v24 = vpop.f32.mrf.mxu1 }
 0x8e1   :  { %v542_v25 = vadd.f32 %v538_v24, %v139_v23 }
 0x8e2   :  { %v1297_v26 = vpop.f32.mrf.mxu1 }
 0x8e3   :  { %1392 = vtanh.f32 %v542_v25  ;;  %v1161_v28 = vmul.f32 -1.442695, %v542_v25  ;;  %v154_v26 = vadd.f32 %v1543_v17, %v1545_v18 }
 0x8e5   :  { %1394 = vpow2.f32 %v1161_v28 }
 0x8f0   :  { %v1393_v27 = vpop.eup %1392 }
 0x8f1   :  { %552 = vrot.lane.b32.xlu0 %v1393_v27, %s1434_s9 }
 0x8f2   :  { %v1395_v29 = vpop.eup %1394 }
 0x8f3   :  { %v546_v30 = vadd.f32 1.0, %v1395_v29 }
 0x8f5   :  { %1396 = vrcp.f32 %v546_v30  ;;  %v1675_v30 = vld [vmem:[%s1727_s2 + $0x20] ss:$0 sm:$0xff] }
 0x902   :  { %v1397_v31 = vpop.eup %1396 }
 0x903   :  { %v550_v34 = vmul.f32 %v1397_v31, %v458_v16  ;;  %v985_v16 = vld [vmem:[#allocation2] sm:$0xff] }
 0x963   :  { %v553_v32 = vpop.permute.xlu0 %552 }
 0x964   :  { %v555_v33 = vmul.f32 %v1397_v31, %v553_v32 }
 0x966   :  { %557 = vrot.lane.b32.xlu1 %v555_v33, %s1435_s1 }
 0x9d8   :  { %v558_v35 = vpop.permute.xlu1 %557 }
 0x9d9   :  { %v560_v36 = vadd.f32 %v558_v35, %v550_v34 }
 0x9db   :  { %1398 = vtanh.f32 %v560_v36 }
 0x9e8   :  { %v1399_v37 = vpop.eup %1398 }
 0x9e9   :  { %563 = vrot.lane.b32.xlu0 %v1399_v37, %s1434_s9 }
 0xa5b   :  { %v564_v38 = vpop.permute.xlu0 %563 }
 0xa5c   :  { %v566_v39 = vmul.f32 %v1397_v31, %v564_v38 }
 0xa5e   :  { %568 = vrot.lane.b32.xlu1 %v566_v39, %s1435_s1 }
 0xad0   :  { %v569_v40 = vpop.permute.xlu1 %568 }
 0xad1   :  { %571 = vst.msk [vmem:[#allocation2 + $0x18] sm:$0xff] %vm162_vm2, %v569_v40  ;;  %1307 = vmatmul.mubr.msk.f32.vlgmr.msra.gmra.mxu0 %vm162_vm2, %v569_v40 }
 0xad2   :  { %1321 = vmatpush3.msra.mxu0 %v1469_v3  ;;  %1328 = vmatprep.mubr.msk.f32.mxu0 %vm1433_vm1, %v1432_v5 }
 0xad3   :  { %1322 = vmatprep.subr.mxu0 %v1432_v5 }
 0xad4   :  { %1323 = vmatpush3.msra.mxu0 %v1486_v8 }
 0xad5   :  { %1324 = vmatprep.subr.mxu0 %v1432_v5 }
 0xad6   :  { %1325 = vmatpush3.msra.mxu0 %v1498_v10 }
 0xad7   :  { %1326 = vmatprep.subr.mxu0 %v1432_v5 }
 0xad8   :  { %1327 = vmatpush3.msra.mxu0 %v1507_v11  ;;  %v988_v23 = vld [vmem:[#allocation2 + $0x18] sm:$0xff] }
 0xad9   :  { %1342 = vmatprep.subr.mxu0 %v983_v2 }
 0xb91   :  { %v640_v42 = vpop.f32.mrf.mxu0 }
 0xb92   :  { %v644_v43 = vadd.f32 %v640_v42, %v144_v41 }
 0xb93   :  { %v1308_v44 = vpop.f32.mrf.mxu0 }
 0xb94   :  { %1400 = vtanh.f32 %v644_v43  ;;  %v1163_v46 = vmul.f32 -1.442695, %v644_v43 }
 0xb96   :  { %1402 = vpow2.f32 %v1163_v46 }
 0xba1   :  { %v1401_v45 = vpop.eup %1400 }
 0xba2   :  { %654 = vrot.lane.b32.xlu0 %v1401_v45, %s1434_s9 }
 0xba3   :  { %v1403_v47 = vpop.eup %1402 }
 0xba4   :  { %v648_v48 = vadd.f32 1.0, %v1403_v47 }
 0xba6   :  { %1404 = vrcp.f32 %v648_v48 }
 0xbb3   :  { %v1405_v49 = vpop.eup %1404 }
 0xbb4   :  { %v652_v52 = vmul.f32 %v1405_v49, %v560_v36 }
 0xc14   :  { %v655_v50 = vpop.permute.xlu0 %654 }
 0xc15   :  { %v657_v51 = vmul.f32 %v1405_v49, %v655_v50 }
 0xc17   :  { %659 = vrot.lane.b32.xlu1 %v657_v51, %s1435_s1 }
 0xc89   :  { %v660_v53 = vpop.permute.xlu1 %659 }
 0xc8a   :  { %v662_v13 = vadd.f32 %v660_v53, %v652_v52 }
 0xc8c   :  { %1406 = vtanh.f32 %v662_v13 }
 0xc99   :  { %v1407_v54 = vpop.eup %1406 }
 0xc9a   :  { %665 = vrot.lane.b32.xlu0 %v1407_v54, %s1434_s9 }
 0xd0c   :  { %v666_v55 = vpop.permute.xlu0 %665 }
 0xd0d   :  { %v668_v56 = vmul.f32 %v1405_v49, %v666_v55 }
 0xd0f   :  { %670 = vrot.lane.b32.xlu1 %v668_v56, %s1435_s1 }
 0xd81   :  { %v671_v57 = vpop.permute.xlu1 %670 }
 0xd82   :  { %673 = vst.msk [vmem:[#allocation2 + $0x20] sm:$0xff] %vm162_vm2, %v671_v57  ;;  %1318 = vmatmul.mubr.msk.f32.vlgmr.msra.gmra.mxu1 %vm162_vm2, %v671_v57 }
 0xd83   :  { %1332 = vmatpush3.msra.mxu1 %v1469_v3  ;;  %1339 = vmatprep.mubr.msk.f32.mxu1 %vm1433_vm1, %v1432_v5 }
 0xd84   :  { %1333 = vmatprep.subr.mxu1 %v1432_v5 }
 0xd85   :  { %1334 = vmatpush3.msra.mxu1 %v1486_v8 }
 0xd86   :  { %1335 = vmatprep.subr.mxu1 %v1432_v5 }
 0xd87   :  { %1336 = vmatpush3.msra.mxu1 %v1498_v10 }
 0xd88   :  { %1337 = vmatprep.subr.mxu1 %v1432_v5 }
 0xd89   :  { %1338 = vmatpush3.msra.mxu1 %v1507_v11  ;;  %v989_v24 = vld [vmem:[#allocation2 + $0x20] sm:$0xff] }
 0xe42   :  { %v742_v59 = vpop.f32.mrf.mxu1 }
 0xe43   :  { %v746_v3 = vadd.f32 %v742_v59, %v149_v58 }
 0xe44   :  { %v1319_v60 = vpop.f32.mrf.mxu1 }
 0xe45   :  { %1408 = vtanh.f32 %v746_v3  ;;  %v1165_v62 = vmul.f32 -1.442695, %v746_v3 }
 0xe47   :  { %1410 = vpow2.f32 %v1165_v62 }
 0xe52   :  { %v1409_v61 = vpop.eup %1408 }
 0xe53   :  { %756 = vrot.lane.b32.xlu0 %v1409_v61, %s1434_s9  ;;  %v159_v61 = vadd.f32 %v1538_v15, %v1543_v17 }
 0xe54   :  { %v1411_v8 = vpop.eup %1410 }
 0xe55   :  { %v750_v63 = vadd.f32 1.0, %v1411_v8 }
 0xe57   :  { %1412 = vrcp.f32 %v750_v63 }
 0xe64   :  { %v1413_v10 = vpop.eup %1412 }
 0xe65   :  { %v754_v11 = vmul.f32 %v1413_v10, %v662_v13 }
 0xec5   :  { %v757_v0 = vpop.permute.xlu0 %756 }
 0xec6   :  { %v759_v5 = vmul.f32 %v1413_v10, %v757_v0 }
 0xec8   :  { %761 = vrot.lane.b32.xlu1 %v759_v5, %s1435_s1 }
 0xf3a   :  { %v762_v1 = vpop.permute.xlu1 %761 }
 0xf3b   :  { %v1645_v12 = vadd.f32 %v762_v1, %v754_v11 }
 0xf3d   :  { %1414 = vtanh.f32 %v1645_v12 }
 0xf4a   :  { %v1415_v4 = vpop.eup %1414 }
 0xf4b   :  { %767 = vrot.lane.b32.xlu0 %v1415_v4, %s1434_s9 }
 0xfbd   :  { %v768_v6 = vpop.permute.xlu0 %767 }
 0xfbe   :  { %v770_v7 = vmul.f32 %v1413_v10, %v768_v6 }
 0xfc0   :  { %772 = vrot.lane.b32.xlu1 %v770_v7, %s1435_s1 }
0x1032   :  { %v773_v9 = vpop.permute.xlu1 %772 }
0x1033   :  { %775 = vst.msk [vmem:[#allocation2 + $0x28] sm:$0xff] %vm162_vm2, %v773_v9  ;;  %1329 = vmatmul.mubr.msk.f32.vlgmr.msra.gmra.mxu0 %vm162_vm2, %v773_v9 }
0x1034   :  { %1343 = vmatpush3.msra.mxu0 %v983_v2  ;;  %1350 = vmatprep.mubr.msk.f32.mxu0 %vm162_vm2, %v985_v16 }
0x1035   :  { %1344 = vmatprep.subr.mxu0 %v982_v14 }
0x1036   :  { %1345 = vmatpush3.msra.mxu0 %v982_v14 }
0x1037   :  { %1346 = vmatprep.subr.mxu0 %v981_v19 }
0x1038   :  { %1347 = vmatpush3.msra.mxu0 %v981_v19 }
0x1039   :  { %1348 = vmatprep.subr.mxu0 %v980_v20 }
0x103a   :  { %1349 = vmatpush3.msra.mxu0 %v980_v20  ;;  %v990_v25 = vld [vmem:[#allocation2 + $0x28] sm:$0xff] }
0x103b   :  { %1351 = vmatmul.mubr.msk.f32.vlgmr.msra.gmra.mxu0 %vm162_vm2, %v986_v21 }
0x103c   :  { %1353 = vmatprep.mubr.msk.f32.mxu0 %vm162_vm2, %v987_v22 }
0x103f   :  { %1354 = vmatmul.mubr.msk.f32.gmra.mxu0 %vm162_vm2, %v988_v23 }
0x1040   :  { %1356 = vmatprep.mubr.msk.f32.mxu0 %vm162_vm2, %v989_v24 }
0x1043   :  { %1357 = vmatmul.mubr.msk.f32.gmra.mxu0 %vm162_vm2, %v990_v25 }
0x10f3   :  { %v844_v27 = vpop.f32.mrf.mxu0 }
0x10f4   :  { %v848_v28 = vadd.f32 %v844_v27, %v154_v26 }
0x10f5   :  { %v1330_v29 = vpop.f32.mrf.mxu0 }
0x10f6   :  { %1416 = vtanh.f32 %v848_v28  ;;  %v1167_v49 = vmul.f32 -1.442695, %v848_v28 }
0x10f8   :  { %1418 = vpow2.f32 %v1167_v49 }
0x10fb   :  { %v1352_v31 = vpop.f32.mrf.mxu0 }
0x10fc   :  { %v1093_v32 = vadd.f32 %v1352_v31, %v1675_v30 }
0x10fd   :  { %v1087_v33 = vpop.f32.mrf.mxu0 }
0x10fe   :  { %v1127_v34 = vmax.f32 %v1093_v32, 0.0  ;;  %v1088_v35 = vadd.f32 %v1675_v30, %v1087_v33 }
0x10ff   :  { %v1355_v36 = vpop.f32.mrf.mxu0 }
0x1100   :  { %1135 = vst [vmem:[%s1728_s3 + $0x8] sm:$0xff] %v1127_v34  ;;  %v1126_v18 = vmax.f32 %v1088_v35, 0.0  ;;  %v1103_v37 = vadd.f32 %v1355_v36, %v1675_v30 }
0x1101   :  { %v1097_v38 = vpop.f32.mrf.mxu0 }
0x1102   :  { %1134 = vst [vmem:[%s1728_s3] sm:$0xff] %v1126_v18  ;;  %v1129_v39 = vmax.f32 %v1103_v37, 0.0  ;;  %v1098_v40 = vadd.f32 %v1675_v30, %v1097_v38 }
0x1103   :  { %v1417_v41 = vpop.eup %1416  ;;  %v1358_v42 = vpop.f32.mrf.mxu0 }
0x1104   :  { %1137 = vst [vmem:[%s1728_s3 + $0x18] sm:$0xff] %v1129_v39  ;;  %v1128_v43 = vmax.f32 %v1098_v40, 0.0  ;;  %v1113_v44 = vadd.f32 %v1358_v42, %v1675_v30  ;;  %858 = vrot.lane.b32.xlu0 %v1417_v41, %s1434_s9 }
0x1105   :  { %v1107_v45 = vpop.f32.mrf.mxu0  ;;  %v1419_v50 = vpop.eup %1418 }
0x1106   :  { %1136 = vst [vmem:[%s1728_s3 + $0x10] sm:$0xff] %v1128_v43  ;;  %v1131_v46 = vmax.f32 %v1113_v44, 0.0  ;;  %v1108_v47 = vadd.f32 %v1675_v30, %v1107_v45  ;;  %v852_v51 = vadd.f32 1.0, %v1419_v50 }
0x1108   :  { %1139 = vst [vmem:[%s1728_s3 + $0x28] sm:$0xff] %v1131_v46  ;;  %v1130_v48 = vmax.f32 %v1108_v47, 0.0  ;;  %1420 = vrcp.f32 %v852_v51 }
0x110a   :  { %1138 = vst [vmem:[%s1728_s3 + $0x20] sm:$0xff] %v1130_v48 }
0x1115   :  { %v1421_v52 = vpop.eup %1420 }
0x1116   :  { %v856_v54 = vmul.f32 %v1421_v52, %v1645_v12 }
0x1176   :  { %v859_v53 = vpop.permute.xlu0 %858 }
0x1177   :  { %v861_v13 = vmul.f32 %v1421_v52, %v859_v53 }
0x1179   :  { %863 = vrot.lane.b32.xlu1 %v861_v13, %s1435_s1 }
0x11eb   :  { %v864_v55 = vpop.permute.xlu1 %863 }
0x11ec   :  { %v866_v56 = vadd.f32 %v864_v55, %v856_v54 }
0x11ee   :  { %1422 = vtanh.f32 %v866_v56 }
0x11fb   :  { %v1423_v57 = vpop.eup %1422 }
0x11fc   :  { %869 = vrot.lane.b32.xlu0 %v1423_v57, %s1434_s9 }
0x126e   :  { %v870_v58 = vpop.permute.xlu0 %869 }
0x126f   :  { %v872_v59 = vmul.f32 %v1421_v52, %v870_v58 }
0x1271   :  { %874 = vrot.lane.b32.xlu1 %v872_v59, %s1435_s1 }
0x12e3   :  { %v875_v3 = vpop.permute.xlu1 %874 }
0x12e4   :  { %877 = vst.msk [vmem:[#allocation2 + $0x30] sm:$0xff] %vm162_vm2, %v875_v3  ;;  %1340 = vmatmul.mubr.msk.f32.vlgmr.msra.gmra.mxu1 %vm162_vm2, %v875_v3 }
0x12eb   :  { %v991_v60 = vld [vmem:[#allocation2 + $0x30] sm:$0xff] }
0x12ec   :  { %1359 = vmatprep.mubr.msk.f32.mxu0 %vm162_vm2, %v991_v60 }
0x13a4   :  { %v946_v62 = vpop.f32.mrf.mxu1 }
0x13a5   :  { %v950_v8 = vadd.f32 %v946_v62, %v159_v61 }
0x13a6   :  { %v1341_v63 = vpop.f32.mrf.mxu1 }
0x13a7   :  { %1424 = vtanh.f32 %v950_v8  ;;  %v1169_v0 = vmul.f32 -1.442695, %v950_v8 }
0x13a9   :  { %1426 = vpow2.f32 %v1169_v0 }
0x13b4   :  { %v1425_v10 = vpop.eup %1424 }
0x13b5   :  { %960 = vrot.lane.b32.xlu0 %v1425_v10, %s1434_s9 }
0x13b6   :  { %v1427_v5 = vpop.eup %1426 }
0x13b7   :  { %v954_v11 = vadd.f32 1.0, %v1427_v5 }
0x13b9   :  { %1428 = vrcp.f32 %v954_v11 }
0x13c6   :  { %v1429_v1 = vpop.eup %1428 }
0x13c7   :  { %v958_v4 = vmul.f32 %v1429_v1, %v866_v56 }
0x1427   :  { %v961_v12 = vpop.permute.xlu0 %960 }
0x1428   :  { %v963_v2 = vmul.f32 %v1429_v1, %v961_v12 }
0x142a   :  { %965 = vrot.lane.b32.xlu1 %v963_v2, %s1435_s1 }
0x149c   :  { %v966_v6 = vpop.permute.xlu1 %965 }
0x149d   :  { %v968_v15 = vadd.f32 %v966_v6, %v958_v4 }
0x149f   :  { %1430 = vtanh.f32 %v968_v15 }
0x14ac   :  { %v1431_v17 = vpop.eup %1430 }
0x14ad   :  { %971 = vrot.lane.b32.xlu0 %v1431_v17, %s1434_s9 }
0x151f   :  { %v972_v7 = vpop.permute.xlu0 %971 }
0x1520   :  { %v974_v9 = vmul.f32 %v1429_v1, %v972_v7 }
0x1522   :  { %976 = vrot.lane.b32.xlu1 %v974_v9, %s1435_s1 }
0x1594   :  { %v977_v14 = vpop.permute.xlu1 %976 }
0x1595   :  { %979 = vst.msk [vmem:[#allocation2 + $0x38] sm:$0xff] %vm162_vm2, %v977_v14 }
0x159c   :  { %v992_v16 = vld [vmem:[#allocation2 + $0x38] sm:$0xff] }
0x159d   :  { %1360 = vmatmul.mubr.msk.f32.gmra.mxu0 %vm162_vm2, %v992_v16 }
0x165d   :  { %v1361_v19 = vpop.f32.mrf.mxu0 }
0x165e   :  { %v1123_v20 = vadd.f32 %v1361_v19, %v1675_v30 }
0x165f   :  { %v1117_v21 = vpop.f32.mrf.mxu0 }
0x1660   :  { %v1133_v22 = vmax.f32 %v1123_v20, 0.0  ;;  %v1118_v23 = vadd.f32 %v1675_v30, %v1117_v21 }
0x1662   :  { %1141 = vst [vmem:[%s1728_s3 + $0x38] sm:$0xff] %v1133_v22  ;;  %v1132_v24 = vmax.f32 %v1118_v23, 0.0 }
0x1664   :  { %1140 = vst [vmem:[%s1728_s3 + $0x30] sm:$0xff] %v1132_v24 }

</bundles_post_ra>
